<compile_context>
chip_gen: v6e
topology: v6e:2x2x1
jax: 0.10.0
libtpu: 0.0.40
codegen_flags: <defaults>
</compile_context>

<pallas_src>
import math
from functools import partial

import jax
import jax.numpy as jnp
from jax.experimental import pallas as pl
from jax.experimental.pallas import tpu as pltpu


# ----------------------------- Pallas kernel ------------------------------ #
def make_cnn_kernel(K, chunk, n_chunks, precision):
    def kernel(x_ref, *rest):
        # refs = (x_ref, w0, b0, [w_i, b_i]*, w_f, b_f, o_ref)
        o_ref = rest[-1]
        wb = rest[:-1]
        n_layers = len(wb) // 2
        cdtype = x_ref.dtype                       # f32 or bf16 compute dtype

        w0 = wb[0][...]                            # (K, H0, C_in) tap-major
        b0 = wb[1][...]                            # (H0, 1) f32
        ws = [wb[2 * i][...] for i in range(1, n_layers)]       # (H_out, H_in)
        bs = [wb[2 * i + 1][...] for i in range(1, n_layers)]   # (H_out, 1) f32
        h0 = w0.shape[1]

        for j in range(n_chunks):                  # static unroll; bounds vregs
            base = j * chunk
            # First conv: K lane-shifted taps (edge padding already material-
            # ized in the wrapper), each a small MXU dot accumulated in f32.
            acc = jnp.zeros((h0, chunk), jnp.float32)
            for k in range(K):
                tap = x_ref[0, :, base + k: base + k + chunk]   # (C_in, chunk)
                acc = acc + jnp.dot(w0[k], tap, precision=precision,
                                    preferred_element_type=jnp.float32)
            h = jnp.maximum(acc + b0, 0.0).astype(cdtype)
            # 1x1 conv stack; ReLU on all but the last layer.
            for i in range(n_layers - 1):
                y = jnp.dot(ws[i], h, precision=precision,
                            preferred_element_type=jnp.float32) + bs[i]
                h = jnp.maximum(y, 0.0).astype(cdtype) if i < n_layers - 2 else y
            o_ref[0, :, base: base + chunk] = h    # (1, chunk) lane-dense f32

    return kernel


# ------------------------------- JAX glue --------------------------------- #
def cnn_forward(U_x, t, params, x_stencil, t_stencil, *,
                use_bf16=False, precision=None):
    """Mirrors CNN_model.forward.  U_x: (B, Nx+1, Nt), t: static python int."""
    B, Nxp1, _ = U_x.shape
    K, C = x_stencil, t_stencil

    # --- t-history slice (matches the torch branches exactly) ---
    if t >= C - 1:
        U_hist = U_x[:, :, t - C + 1: t + 1]                     # (B, Nxp1, C)
    else:
        pad = jnp.broadcast_to(U_x[:, :, 0:1], (B, Nxp1, C - t))
        U_hist = jnp.concatenate([pad, U_x[:, :, :t]], axis=2)
    x_ncl = jnp.moveaxis(U_hist, 2, 1).astype(jnp.float32)       # (B, C, Nxp1)

    # --- geometry ---
    pad_right = (K - 2) // 2
    pad_left = K - pad_right - 2
    L_out = Nxp1 + pad_left + pad_right - K + 1                  # == Nxp1 - 1

    Lo = pl.cdiv(L_out, 128) * 128                               # lane-dense out width
    chunk = next(c for c in (512, 256, 128) if Lo % c == 0)      # in-kernel chunking
    n_chunks = Lo // chunk
    Lp = Lo + 128                                                # conv halo, 128-aligned

    # Replicate ("edge") pad: conv halo + lane padding in ONE small pad of the
    # original-sized array. Columns past L_out are finite edge copies whose
    # outputs get sliced off below (no NaNs, no K-times im2col in HBM).
    x_pad = jnp.pad(x_ncl, ((0, 0), (0, 0),
                            (pad_left, Lp - Nxp1 - pad_left)), mode="edge")

    cdtype = jnp.bfloat16 if use_bf16 else jnp.float32
    x_pad = x_pad.astype(cdtype)
    # Pre-cast weights to the compute dtype in the wrapper; biases stay f32.
    wbs = [p.astype(cdtype) if i % 2 == 0 else p.astype(jnp.float32)
           for i, p in enumerate(params)]

    # Advisory cost hint for XLA's scheduler around the custom call.
    per_col_flops = 2 * K * C * params[0].shape[1]
    for i in range(1, len(params) // 2):
        per_col_flops += 2 * params[2 * i].shape[0] * params[2 * i].shape[1]
    cost = pl.CostEstimate(
        flops=B * Lo * per_col_flops,
        transcendentals=0,
        bytes_accessed=(int(x_pad.size) * x_pad.dtype.itemsize
                        + sum(int(w.size) * w.dtype.itemsize for w in wbs)
                        + B * Lo * 4))

    in_specs = [pl.BlockSpec((1, C, Lp), lambda b: (b, 0, 0)),    # one batch row
                pl.BlockSpec(wbs[0].shape, lambda b: (0, 0, 0))]  # W0 (K,H0,C)
    in_specs += [pl.BlockSpec(p.shape, lambda b: (0, 0)) for p in wbs[1:]]

    out = pl.pallas_call(
        make_cnn_kernel(K, chunk, n_chunks, precision),
        out_shape=jax.ShapeDtypeStruct((B, 1, Lo), jnp.float32),
        grid=(B,),
        in_specs=in_specs,
        out_specs=pl.BlockSpec((1, 1, Lo), lambda b: (b, 0, 0)),
        compiler_params=pltpu.CompilerParams(
            dimension_semantics=("parallel",)),
        cost_estimate=cost,
    )(x_pad, *wbs)
    return out[:, 0, :L_out]                       # == torch out.squeeze(1)


def cnn_forward_ref(U_x, t, params, x_stencil, t_stencil):
    """Pure-JAX reference (edge-pad + per-tap conv), HIGHEST precision."""
    B, Nxp1, _ = U_x.shape
    K, C = x_stencil, t_stencil
    if t >= C - 1:
        U_hist = U_x[:, :, t - C + 1: t + 1]
    else:
        pad = jnp.broadcast_to(U_x[:, :, 0:1], (B, Nxp1, C - t))
        U_hist = jnp.concatenate([pad, U_x[:, :, :t]], axis=2)
    U_hist = U_hist.astype(jnp.float32)                          # (B, Nxp1, C)
    pad_right = (K - 2) // 2
    pad_left = K - pad_right - 2
    x = jnp.pad(U_hist, ((0, 0), (pad_left, pad_right), (0, 0)), mode="edge")
    L_out = x.shape[1] - K + 1
    hp = jax.lax.Precision.HIGHEST

    w0, b0 = params[0], params[1][:, 0]                          # (K,H0,C), (H0,)
    h = sum(jnp.einsum("blc,hc->blh", x[:, k:k + L_out, :], w0[k], precision=hp)
            for k in range(K)) + b0
    h = jnp.maximum(h, 0.0)
    wb = params[2:]
    for i in range(0, len(wb) - 2, 2):
        h = jnp.maximum(jnp.einsum("blh,gh->blg", h, wb[i], precision=hp)
                        + wb[i + 1][:, 0], 0.0)
    out = jnp.einsum("blh,gh->blg", h, wb[-2], precision=hp) + wb[-1][:, 0]
    return out[..., 0]


def init_params(key, x_stencil, t_stencil, hidden_dims):
    """Kaiming-uniform (relu gain) weights, biases = 0.01.

    Layouts (kernel-native):
      first conv : (K, H0, C_in)   == torch (H0, C_in, K) permuted to (K, H0, C_in)
      1x1 convs  : (H_out, H_in)   == torch (H_out, H_in, 1)[..., 0]
      biases     : (H, 1)
    """
    params = []

    def kaiming(k, shape, fan_in):
        bound = math.sqrt(6.0 / fan_in)           # gain(relu) * sqrt(3 / fan_in)
        return jax.random.uniform(k, shape, jnp.float32, -bound, bound)

    K, C = x_stencil, t_stencil
    key, sub = jax.random.split(key)
    params.append(kaiming(sub, (K, hidden_dims[0], C), K * C))
    params.append(jnp.full((hidden_dims[0], 1), 0.01, jnp.float32))
    for i in range(len(hidden_dims) - 1):
        key, sub = jax.random.split(key)
        params.append(kaiming(sub, (hidden_dims[i + 1], hidden_dims[i]),
                              hidden_dims[i]))
        params.append(jnp.full((hidden_dims[i + 1], 1), 0.01, jnp.float32))
    key, sub = jax.random.split(key)
    params.append(kaiming(sub, (1, hidden_dims[-1]), hidden_dims[-1]))
    params.append(jnp.full((1, 1), 0.01, jnp.float32))
    return params


# --------------------------------- main ------------------------------------ #
if __name__ == "__main__":
    B, Nxp1, Nt = 2, 16, 8
    x_stencil, t_stencil = 5, 3
    hidden_dims = [32, 32]
    t = 4                                          # static time index (>= t_stencil-1)

    key = jax.random.PRNGKey(0)
    key, kx = jax.random.split(key)
    U_x = jax.random.normal(kx, (B, Nxp1, Nt), jnp.float32)
    params = init_params(key, x_stencil, t_stencil, hidden_dims)

    # Production config: DEFAULT matmul precision (fast on v5e), f32 I/O.
    fwd = jax.jit(partial(cnn_forward, t=t, params=params,
                          x_stencil=x_stencil, t_stencil=t_stencil))
    out = jax.block_until_ready(fwd(U_x))

    ref = cnn_forward_ref(U_x, t, params, x_stencil, t_stencil)
    assert out.shape == (B, Nxp1 - 1), out.shape
    # DEFAULT precision may use reduced-precision MXU passes -> loose tolerance.
    assert jnp.allclose(out, ref, atol=5e-2, rtol=5e-2), "mismatch (fast path)"

    # Validation config: HIGHEST-precision kernel vs HIGHEST reference (tight).
    out_hi = jax.block_until_ready(
        jax.jit(partial(cnn_forward, t=t, params=params,
                        x_stencil=x_stencil, t_stencil=t_stencil,
                        precision=jax.lax.Precision.HIGHEST))(U_x))
    assert jnp.allclose(out_hi, ref, atol=1e-4, rtol=1e-4), "mismatch (validated)"

    print("KERNEL_OK")
</pallas_src>

<mosaic_0001>
module attributes {stable_mosaic.version = 11 : i64} {
  func.func @kernel(%arg0: i32, %arg1: memref<1x3x256xf32, #tpu.memory_space<vmem>>, %arg2: memref<5x32x3xf32, #tpu.memory_space<vmem>>, %arg3: memref<32x1xf32, #tpu.memory_space<vmem>>, %arg4: memref<32x32xf32, #tpu.memory_space<vmem>>, %arg5: memref<32x1xf32, #tpu.memory_space<vmem>>, %arg6: memref<1x32xf32, #tpu.memory_space<vmem>>, %arg7: memref<1x1xf32, #tpu.memory_space<vmem>>, %arg8: memref<1x1x128xf32, #tpu.memory_space<vmem>>) attributes {dimension_semantics = [#tpu.dimension_semantics<parallel>], iteration_bounds = array<i64: 2>, scalar_prefetch = 0 : i64, scratch_operands = 0 : i64, tpu.core_type = #tpu.core_type<tc>, window_params = [{transform_indices = @transform_0, window_bounds = array<i64: 1, 3, 256>}, {pipeline_mode = #tpu.pipeline_mode<synchronous>, transform_indices = @transform_1, window_bounds = array<i64: 5, 32, 3>}, {pipeline_mode = #tpu.pipeline_mode<synchronous>, transform_indices = @transform_2, window_bounds = array<i64: 32, 1>}, {pipeline_mode = #tpu.pipeline_mode<synchronous>, transform_indices = @transform_3, window_bounds = array<i64: 32, 32>}, {pipeline_mode = #tpu.pipeline_mode<synchronous>, transform_indices = @transform_4, window_bounds = array<i64: 32, 1>}, {pipeline_mode = #tpu.pipeline_mode<synchronous>, transform_indices = @transform_5, window_bounds = array<i64: 1, 32>}, {pipeline_mode = #tpu.pipeline_mode<synchronous>, transform_indices = @transform_6, window_bounds = array<i64: 1, 1>}, {transform_indices = @transform_7, window_bounds = array<i64: 1, 1, 128>}]} {
    %c0 = arith.constant 0 : index
    %c0_0 = arith.constant 0 : index
    %c0_1 = arith.constant 0 : index
    %0 = vector.load %arg2[%c0, %c0_0, %c0_1] : memref<5x32x3xf32, #tpu.memory_space<vmem>>, vector<5x32x3xf32>
    %c0_2 = arith.constant 0 : index
    %c0_3 = arith.constant 0 : index
    %1 = vector.load %arg3[%c0_2, %c0_3] : memref<32x1xf32, #tpu.memory_space<vmem>>, vector<32x1xf32>
    %c0_4 = arith.constant 0 : index
    %c0_5 = arith.constant 0 : index
    %2 = vector.load %arg4[%c0_4, %c0_5] : memref<32x32xf32, #tpu.memory_space<vmem>>, vector<32x32xf32>
    %c0_6 = arith.constant 0 : index
    %c0_7 = arith.constant 0 : index
    %3 = vector.load %arg6[%c0_6, %c0_7] : memref<1x32xf32, #tpu.memory_space<vmem>>, vector<1x32xf32>
    %c0_8 = arith.constant 0 : index
    %c0_9 = arith.constant 0 : index
    %4 = vector.load %arg5[%c0_8, %c0_9] : memref<32x1xf32, #tpu.memory_space<vmem>>, vector<32x1xf32>
    %c0_10 = arith.constant 0 : index
    %c0_11 = arith.constant 0 : index
    %5 = vector.load %arg7[%c0_10, %c0_11] : memref<1x1xf32, #tpu.memory_space<vmem>>, vector<1x1xf32>
    %cst = arith.constant 0.000000e+00 : f32
    %6 = vector.broadcast %cst : f32 to vector<32x128xf32>
    %c0_12 = arith.constant 0 : index
    %c0_13 = arith.constant 0 : index
    %c0_14 = arith.constant 0 : index
    %7 = vector.load %arg1[%c0_12, %c0_13, %c0_14] : memref<1x3x256xf32, #tpu.memory_space<vmem>>, vector<1x3x128xf32>
    %8 = vector.shape_cast %7 : vector<1x3x128xf32> to vector<3x128xf32>
    %9 = vector.extract_strided_slice %0 {offsets = [0, 0, 0], sizes = [1, 32, 3], strides = [1, 1, 1]} : vector<5x32x3xf32> to vector<1x32x3xf32>
    %10 = vector.shape_cast %9 : vector<1x32x3xf32> to vector<32x3xf32>
    %cst_15 = arith.constant dense<0.000000e+00> : vector<32x128xf32>
    %11 = tpu.matmul %10, %8, %cst_15 {dimension_numbers = #tpu.dot_dimension_numbers<[1], [0], [0], [1], [0, 0, 1, 1], [], []>} : vector<32x3xf32>, vector<3x128xf32>, vector<32x128xf32> -> vector<32x128xf32>
    %12 = arith.addf %6, %11 : vector<32x128xf32>
    %c0_16 = arith.constant 0 : index
    %c0_17 = arith.constant 0 : index
    %c1 = arith.constant 1 : index
    %13 = vector.load %arg1[%c0_16, %c0_17, %c1] : memref<1x3x256xf32, #tpu.memory_space<vmem>>, vector<1x3x128xf32>
    %14 = vector.shape_cast %13 : vector<1x3x128xf32> to vector<3x128xf32>
    %15 = vector.extract_strided_slice %0 {offsets = [1, 0, 0], sizes = [1, 32, 3], strides = [1, 1, 1]} : vector<5x32x3xf32> to vector<1x32x3xf32>
    %16 = vector.shape_cast %15 : vector<1x32x3xf32> to vector<32x3xf32>
    %cst_18 = arith.constant dense<0.000000e+00> : vector<32x128xf32>
    %17 = tpu.matmul %16, %14, %cst_18 {dimension_numbers = #tpu.dot_dimension_numbers<[1], [0], [0], [1], [0, 0, 1, 1], [], []>} : vector<32x3xf32>, vector<3x128xf32>, vector<32x128xf32> -> vector<32x128xf32>
    %18 = arith.addf %12, %17 : vector<32x128xf32>
    %c0_19 = arith.constant 0 : index
    %c0_20 = arith.constant 0 : index
    %c2 = arith.constant 2 : index
    %19 = vector.load %arg1[%c0_19, %c0_20, %c2] : memref<1x3x256xf32, #tpu.memory_space<vmem>>, vector<1x3x128xf32>
    %20 = vector.shape_cast %19 : vector<1x3x128xf32> to vector<3x128xf32>
    %21 = vector.extract_strided_slice %0 {offsets = [2, 0, 0], sizes = [1, 32, 3], strides = [1, 1, 1]} : vector<5x32x3xf32> to vector<1x32x3xf32>
    %22 = vector.shape_cast %21 : vector<1x32x3xf32> to vector<32x3xf32>
    %cst_21 = arith.constant dense<0.000000e+00> : vector<32x128xf32>
    %23 = tpu.matmul %22, %20, %cst_21 {dimension_numbers = #tpu.dot_dimension_numbers<[1], [0], [0], [1], [0, 0, 1, 1], [], []>} : vector<32x3xf32>, vector<3x128xf32>, vector<32x128xf32> -> vector<32x128xf32>
    %24 = arith.addf %18, %23 : vector<32x128xf32>
    %c0_22 = arith.constant 0 : index
    %c0_23 = arith.constant 0 : index
    %c3 = arith.constant 3 : index
    %25 = vector.load %arg1[%c0_22, %c0_23, %c3] : memref<1x3x256xf32, #tpu.memory_space<vmem>>, vector<1x3x128xf32>
    %26 = vector.shape_cast %25 : vector<1x3x128xf32> to vector<3x128xf32>
    %27 = vector.extract_strided_slice %0 {offsets = [3, 0, 0], sizes = [1, 32, 3], strides = [1, 1, 1]} : vector<5x32x3xf32> to vector<1x32x3xf32>
    %28 = vector.shape_cast %27 : vector<1x32x3xf32> to vector<32x3xf32>
    %cst_24 = arith.constant dense<0.000000e+00> : vector<32x128xf32>
    %29 = tpu.matmul %28, %26, %cst_24 {dimension_numbers = #tpu.dot_dimension_numbers<[1], [0], [0], [1], [0, 0, 1, 1], [], []>} : vector<32x3xf32>, vector<3x128xf32>, vector<32x128xf32> -> vector<32x128xf32>
    %30 = arith.addf %24, %29 : vector<32x128xf32>
    %c0_25 = arith.constant 0 : index
    %c0_26 = arith.constant 0 : index
    %c4 = arith.constant 4 : index
    %31 = vector.load %arg1[%c0_25, %c0_26, %c4] : memref<1x3x256xf32, #tpu.memory_space<vmem>>, vector<1x3x128xf32>
    %32 = vector.shape_cast %31 : vector<1x3x128xf32> to vector<3x128xf32>
    %33 = vector.extract_strided_slice %0 {offsets = [4, 0, 0], sizes = [1, 32, 3], strides = [1, 1, 1]} : vector<5x32x3xf32> to vector<1x32x3xf32>
    %34 = vector.shape_cast %33 : vector<1x32x3xf32> to vector<32x3xf32>
    %cst_27 = arith.constant dense<0.000000e+00> : vector<32x128xf32>
    %35 = tpu.matmul %34, %32, %cst_27 {dimension_numbers = #tpu.dot_dimension_numbers<[1], [0], [0], [1], [0, 0, 1, 1], [], []>} : vector<32x3xf32>, vector<3x128xf32>, vector<32x128xf32> -> vector<32x128xf32>
    %36 = arith.addf %30, %35 : vector<32x128xf32>
    %37 = vector.broadcast %1 : vector<32x1xf32> to vector<32x128xf32>
    %38 = arith.addf %36, %37 : vector<32x128xf32>
    %cst_28 = arith.constant 0.000000e+00 : f32
    %39 = vector.broadcast %cst_28 : f32 to vector<32x128xf32>
    %40 = arith.maximumf %38, %39 : vector<32x128xf32>
    %cst_29 = arith.constant dense<0.000000e+00> : vector<32x128xf32>
    %41 = tpu.matmul %2, %40, %cst_29 {dimension_numbers = #tpu.dot_dimension_numbers<[1], [0], [0], [1], [0, 0, 1, 1], [], []>} : vector<32x32xf32>, vector<32x128xf32>, vector<32x128xf32> -> vector<32x128xf32>
    %42 = vector.broadcast %4 : vector<32x1xf32> to vector<32x128xf32>
    %43 = arith.addf %41, %42 : vector<32x128xf32>
    %cst_30 = arith.constant 0.000000e+00 : f32
    %44 = vector.broadcast %cst_30 : f32 to vector<32x128xf32>
    %45 = arith.maximumf %43, %44 : vector<32x128xf32>
    %cst_31 = arith.constant dense<0.000000e+00> : vector<1x128xf32>
    %46 = tpu.matmul %3, %45, %cst_31 {dimension_numbers = #tpu.dot_dimension_numbers<[1], [0], [0], [1], [0, 0, 1, 1], [], []>} : vector<1x32xf32>, vector<32x128xf32>, vector<1x128xf32> -> vector<1x128xf32>
    %47 = vector.broadcast %5 : vector<1x1xf32> to vector<1x128xf32>
    %48 = arith.addf %46, %47 : vector<1x128xf32>
    %c0_32 = arith.constant 0 : index
    %c0_33 = arith.constant 0 : index
    %c0_34 = arith.constant 0 : index
    %49 = vector.load %arg8[%c0_32, %c0_33, %c0_34] : memref<1x1x128xf32, #tpu.memory_space<vmem>>, vector<1x1x128xf32>
    %50 = vector.shape_cast %49 : vector<1x1x128xf32> to vector<1x128xf32>
    %51 = vector.shape_cast %48 : vector<1x128xf32> to vector<1x1x128xf32>
    tpu.vector_store %arg8[%c0_32, %c0_33, %c0_34], %51 {strides = array<i32>} : memref<1x1x128xf32, #tpu.memory_space<vmem>>, vector<1x1x128xf32>,
    return
  }
  func.func @transform_0(%arg0: i32) -> (i32, i32, i32) {
    %c0_i32 = arith.constant 0 : i32
    %c0_i32_0 = arith.constant 0 : i32
    %c0_i32_1 = arith.constant 0 : i32
    return %arg0, %c0_i32, %c0_i32_0 : i32, i32, i32
  }
  func.func @transform_1(%arg0: i32) -> (i32, i32, i32) {
    %c0_i32 = arith.constant 0 : i32
    %c0_i32_0 = arith.constant 0 : i32
    %c0_i32_1 = arith.constant 0 : i32
    %c0_i32_2 = arith.constant 0 : i32
    return %c0_i32, %c0_i32_0, %c0_i32_1 : i32, i32, i32
  }
  func.func @transform_2(%arg0: i32) -> (i32, i32) {
    %c0_i32 = arith.constant 0 : i32
    %c0_i32_0 = arith.constant 0 : i32
    %c0_i32_1 = arith.constant 0 : i32
    return %c0_i32, %c0_i32_0 : i32, i32
  }
  func.func @transform_3(%arg0: i32) -> (i32, i32) {
    %c0_i32 = arith.constant 0 : i32
    %c0_i32_0 = arith.constant 0 : i32
    %c0_i32_1 = arith.constant 0 : i32
    return %c0_i32, %c0_i32_0 : i32, i32
  }
  func.func @transform_4(%arg0: i32) -> (i32, i32) {
    %c0_i32 = arith.constant 0 : i32
    %c0_i32_0 = arith.constant 0 : i32
    %c0_i32_1 = arith.constant 0 : i32
    return %c0_i32, %c0_i32_0 : i32, i32
  }
  func.func @transform_5(%arg0: i32) -> (i32, i32) {
    %c0_i32 = arith.constant 0 : i32
    %c0_i32_0 = arith.constant 0 : i32
    %c0_i32_1 = arith.constant 0 : i32
    return %c0_i32, %c0_i32_0 : i32, i32
  }
  func.func @transform_6(%arg0: i32) -> (i32, i32) {
    %c0_i32 = arith.constant 0 : i32
    %c0_i32_0 = arith.constant 0 : i32
    %c0_i32_1 = arith.constant 0 : i32
    return %c0_i32, %c0_i32_0 : i32, i32
  }
  func.func @transform_7(%arg0: i32) -> (i32, i32, i32) {
    %c0_i32 = arith.constant 0 : i32
    %c0_i32_0 = arith.constant 0 : i32
    %c0_i32_1 = arith.constant 0 : i32
    return %arg0, %c0_i32, %c0_i32_0 : i32, i32, i32
  }
}

</mosaic_0001>

<bundles_post_ra>
// kernel: cnn_forward.1
= control target key start
LH: loop header
LB: loop body
LE: loop exit
PB: predicated region body
PF: predicated region fallthrough
CT: control target
= control target key end

     0   :  { %s1728_s0 = inlined_call_operand.vmem [shape: f32[2,3,256], index: 0, kind: input, shape index: {}]   ;;  %s1729_s1 = inlined_call_operand.hbm [shape: f32[5,32,3], index: 1, kind: input, shape index: {}]   ;;  %s1730_s2 = inlined_call_operand.vmem [shape: f32[32,1], index: 2, kind: input, shape index: {}, may-alias: {2,4}]   ;;  %s1731_s3 = inlined_call_operand.vmem [shape: f32[32,32], index: 3, kind: input, shape index: {}]   ;;  %s1732_s4 = inlined_call_operand.vmem [shape: f32[32,1], index: 4, kind: input, shape index: {}, may-alias: {2,4}]   ;;  %s1733_s5 = inlined_call_operand.vmem [shape: f32[1,32], index: 5, kind: input, shape index: {}]   ;;  %s1734_s6 = inlined_call_operand.<no memory space> [shape: f32[1,1], index: 6, kind: input, shape index: {}]   ;;  %s1735_s7 = inlined_call_operand.hbm [shape: f32[2,1,128], index: 7, kind: output, shape index: {}]  }
   0x1   :  { %v12_v0 = vstv %s1734_s6 }
   0x2   :  { %13 = vst [vmem:[#allocation2] sm:$0x1] %v12_v0 }
   0x3   :  { %14 = vsyncpa [#allocation4], 0 }
   0x4   :  { %15 = vsyncpa [#allocation5], 0 }
   0x5   :  { %17 = vsyncpa [#allocation5 + $0x1], 0  ;;  %s1543_s26 = smov 0   ;;  %s1545_s27 = smov 0  }
   0x6   :  { %s1547_s28 = smov 0   ;;  %s1549_s29 = smov 0  }
   0x7 LB: > { %s1564_s6 = sadd.s32 4294967295, %s1487_s29   ;;  %s1187_s30 = sadd.s32 4294967294, %s1487_s29   ;;  %s1487_s29 = sphi %s1549_s29, %s1743_s29   ;;  %s1483_s28 = sphi %s1547_s28, %s1742_s28   ;;  %s1479_s27 = sphi %s1545_s27, %s1741_s27   ;;  %s1475_s26 = sphi %s1543_s26, %s1740_s26  }
   0x8   : > { %s1568_s8 = sadd.s32 1, %s1487_s29   ;;  %s182_s9 = sadd.s32 1, %s1483_s28 }
   0x9   : > { %s179_s10 = ssub.s32 %s1487_s29, %s1568_s8  ;;  %p192_p0 = scmp.ne.s32.totalorder %s1483_s28, %s1479_s27 }
   0xa   : > { %p180_p1 = scmp.eq.s32.totalorder %s179_s10, 0  ;;  %p193_p2 = scmp.eq.s32.totalorder %s1564_s6, 1 }
   0xb   : > { %p198_p3 = scmp.ne.s32.totalorder %s1479_s27, %s1475_s26  ;;  %p199_p4 = scmp.eq.s32.totalorder %s1187_s30, 1 }
   0xc   : > { %s1579_s11 = scalar_select %p180_p1, %s1483_s28, %s182_s9  }
   0xd   : > { %p1581_p5 = por %p193_p2, %p192_p0  ;;  %p1585_p6 = por %p199_p4, %p198_p3 }
   0xe   : > { %p1188_p7 = scmp.ge.s32.totalorder %s1487_s29, 1  ;;  %p206_p8 = scmp.lt.s32.totalorder %s1487_s29, 3 }
   0xf   : > { %s1737_s13 = scalar_select %p1585_p6, 1, 0 }
  0x10   : > { %p1346_p9 = scmp.eq.s32.totalorder %s1564_s6, 0  ;;  %p1592_p10 = pnand %p1188_p7, %p206_p8 }
  0x11   : > { %s1489_s15 = smov [#allocation3]  }
  0x12   : > { %s218_s16 = sshll.u32 %s1489_s15, 4  ;;  %p1338_p11 = pneg %p1592_p10  ;;  %s219_s16 = int_to_ptr.vmem [resolvable:$true] %s218_s16 }
  0x13   : > { %s1408_s17 = scalar_lea.vmem %s219_s16, 2560  ;;  %p1416_p3 = scmp.lt.s32.totalorder %s219_s16, %s219_s16 }
  0x14   : > { %p1339_p12 = pnand %p1346_p9, %p1338_p11  ;;  %p1409_p0 = scmp.ne.s32.totalorder %s219_s16, %s1408_s17 }
  0x15   : > { %p1417_p4 = scmp.lt.s32.totalorder %s1408_s17, %s1408_s17 }
  0x16   : > { %p1399_p13 = pneg %p1339_p12 }
  0x17   : > { %p1418_p6 = por %p1417_p4, %p1416_p3 }
  0x18   : > { %p1411_p1 = pnand %p1409_p0, %p1399_p13 }
  0x1a   : > { %p1412_p2 = pneg %p1411_p1 }
  0x1c   : > { %p1419_p7 = pnand %p1418_p6, %p1412_p2 }
  0x1e   : > { %1422 = shalt.err (!%p1419_p7)
}
  0x1f   : > { %s1490_s18 = smov 128   ;;  %s1491_s19 = smov 8  }
  0x20   : > { %1341 = dma.hbm_to_vmem [thread:$0]  (!%p1339_p12), %s1729_s1, 2560, %s219_s16, [#allocation4], %s1490_s18, %s1490_s18, %s1491_s19  }
  0x21   : > { %257 = sbr.rel (%p1592_p10) target bundleno = 812 (0x32c), region = 48 }
  0x26   : > { %1466 = dma.done.wait (%p1346_p9), [#allocation4], 2560  }
  0x27   : > { %1468 = vsyncadd (%p1346_p9), [#allocation4], 4294964736  ;;  %p288_p8 = scmp.lt.s32.totalorder %s1564_s6, 1  ;;  %vm350_vm0 = vcmask 1042432   ;;  %vm337_vm1 = vcmask 23552   ;;  %s1492_s9 = smov 126  }
  0x28   : > { %s1493_s10 = smov 127   ;;  %v297_v6 = vld [vmem:[#allocation3 + $0x20] sm:$0xff]  ;;  %v294_v9 = vld [vmem:[#allocation3 + $0x8] sm:$0xff]  ;;  %v295_v10 = vld [vmem:[#allocation3 + $0x10] sm:$0xff]  ;;  %s1494_s14 = smov 125   ;;  %v1496_v18 = vmov 0  }
  0x29   : > { %s289_s22 = scalar_select %p288_p8, %s1564_s6, 1  ;;  %1269 = vmatprep.mubr.msk.f32.mxu0 %vm337_vm1, %v297_v6  ;;  %v293_v8 = vld [vmem:[#allocation3] sm:$0xff]  ;;  %v296_v12 = vld [vmem:[#allocation3 + $0x18] sm:$0xff]  ;;  %v315_v16 = vld [vmem:[%s1730_s2 + $0x10] sm:$0xff]  ;;  %1392 = vset.pattern.permute.xlu1 %v1496_v18  ;;  %vm545_vm2 = vcmask 1031168   ;;  %vm335_vm3 = vcmask 1039360  }
  0x2a   : > { %1277 = vmatprep.mubr.msk.f32.mxu1 %vm337_vm1, %v293_v8  ;;  %v305_v14 = vld [vmem:[#allocation3 + $0x60] sm:$0xff]  ;;  %s1495_s15 = smov 124   ;;  %v316_v17 = vld [vmem:[%s1730_s2 + $0x18] sm:$0xff]  ;;  %1391 = vset.pattern.permute.xlu0 %v1496_v18  ;;  %v324_v22 = vld [vmem:[%s1732_s4 + $0x10] sm:$0xff]  ;;  %vm657_vm4 = vcmask 1022976   ;;  %vm769_vm5 = vcmask 1014784  }
  0x2b   : > { %s1228_s23 = sshll.u32 %s289_s22, 3  ;;  %v314_v19 = vld [vmem:[%s1730_s2 + $0x8] sm:$0xff]  ;;  %v313_v20 = vld [vmem:[%s1730_s2] sm:$0xff]  ;;  %v325_v21 = vld [vmem:[%s1732_s4 + $0x18] sm:$0xff]  ;;  %vm922_vm6 = vcmask 261120   ;;  %vm1498_vm7 = vmmov 0  }
  0x2c   : > { %s292_s30 = scalar_lea.vmem %s1728_s0, %s1228_s23  ;;  %v323_v23 = vld [vmem:[%s1732_s4 + $0x8] sm:$0xff]  ;;  %v322_v24 = vld [vmem:[%s1732_s4] sm:$0xff]  ;;  %v299_v33 = vld [vmem:[#allocation3 + $0x30] sm:$0xff] }
  0x2d   : > { %v538_v1 = vld [vmem:[%s292_s30] sm:$0x77]  ;;  %v298_v32 = vld [vmem:[#allocation3 + $0x28] sm:$0xff]  ;;  %v307_v40 = vld [vmem:[#allocation3 + $0x70] sm:$0xff] }
  0x2e   : > { %v328_v2 = vld [vmem:[%s292_s30] sm:$0x77]  ;;  %541 = vrot.lane.b32.xlu1 %v538_v1, %s1492_s9  ;;  %v540_v3 = vcombine.high %v538_v1, %v538_v1  ;;  %v306_v38 = vld [vmem:[#allocation3 + $0x68] sm:$0xff]  ;;  %v303_v46 = vld [vmem:[#allocation3 + $0x50] sm:$0xff] }
  0x2f   : > { %331 = vrot.lane.b32.xlu0 %v328_v2, %s1493_s10  ;;  %v330_v4 = vcombine.high %v328_v2, %v328_v2  ;;  %v327_v5 = vld [vmem:[%s292_s30] sm:$0x7]  ;;  %v302_v44 = vld [vmem:[#allocation3 + $0x48] sm:$0xff]  ;;  %v311_v50 = vld [vmem:[#allocation3 + $0x90] sm:$0xff] }
  0x30   : > { %v650_v7 = vld [vmem:[%s292_s30] sm:$0x77]  ;;  %1275 = vmatprep.subr.msk.mxu1 %vm350_vm0, %v327_v5  ;;  %v310_v49 = vld [vmem:[#allocation3 + $0x88] sm:$0xff] }
  0x31   : > { %1276 = vmatpush3.msk.msra.mxu1 %vm350_vm0, %v327_v5  ;;  %v652_v11 = vcombine.high %v650_v7, %v650_v7  ;;  %v762_v13 = vld [vmem:[%s292_s30] sm:$0x77] }
  0x32   : > { %1278 = vmatmul.mubr.msk.f32.vlgmr.msra.gmra.mxu1 %vm337_vm1, %v294_v9  ;;  %543 = vrot.lane.b32.xlu1 %v540_v3, %s1492_s9  ;;  %v764_v15 = vcombine.high %v762_v13, %v762_v13  ;;  %v326_v25 = vld [vmem:[#allocation2] sm:$0x1]  ;;  %v301_v39 = vld [vmem:[#allocation3 + $0x40] sm:$0xff]  ;;  %s286_s9 = sand.u32 1, %s1479_s27  }
  0x33   : > { %333 = vrot.lane.b32.xlu0 %v330_v4, %s1493_s10  ;;  %1280 = vmatprep.mubr.msk.f32.mxu1 %vm337_vm1, %v295_v10  ;;  %v300_v37 = vld [vmem:[#allocation3 + $0x38] sm:$0xff]  ;;  %v309_v48 = vld [vmem:[#allocation3 + $0x80] sm:$0xff]  ;;  %s1225_s10 = sshll.u32 %s1564_s6, 4  ;;  %s1108_s19 = scalar_lea.sflag [#allocation5], %s286_s9 }
  0x34   : > { %v308_v45 = vld [vmem:[#allocation3 + $0x78] sm:$0xff]  ;;  %s1693_s18 = scalar_lea.hbm %s1735_s7, %s1225_s10  ;;  %s1499_s6 = smov [#allocation6]  }
  0x35   : > { %v304_v47 = vld [vmem:[#allocation3 + $0x58] sm:$0xff]  ;;  %s1427_s21 = sshll.u32 %s1499_s6, 4  ;;  %s1428_s21 = int_to_ptr.vmem [resolvable:$false] %s1427_s21 }
  0x36   : > { %1281 = vmatmul.mubr.msk.f32.gmra.mxu1 %vm337_vm1, %v296_v12  ;;  %655 = vrot.lane.b32.xlu1 %v652_v11, %s1494_s14  ;;  %v312_v51 = vld [vmem:[#allocation3 + $0x98] sm:$0xff]  ;;  %s1429_s22 = scalar_lea.vmem %s1428_s21, 32 }
  0x37   : > { %653 = vrot.lane.b32.xlu0 %v650_v7, %s1494_s14  ;;  %1293 = vmatprep.mubr.msk.f32.mxu1 %vm337_vm1, %v305_v14  ;;  %v317_v52 = vld [vmem:[%s1731_s3] sm:$0xff]  ;;  %s287_s14 = scalar_lea.vmem [#allocation6], %s286_s9 }
  0x3a   : > { %767 = vrot.lane.b32.xlu1 %v764_v15, %s1495_s15 }
  0x3b   : > { %765 = vrot.lane.b32.xlu0 %v762_v13, %s1495_s15  ;;  %s1120_s15 = sshll.u32 %s287_s14, 4  ;;  %s1121_s15 = int_to_ptr.vmem [resolvable:$true] %s1120_s15 }
  0x3c   : > { %s1423_s20 = scalar_lea.vmem %s1121_s15, 16  ;;  %p1430_p11 = scmp.lt.s32.totalorder %s1121_s15, %s1428_s21 }
  0x3d   : > { %p1424_p6 = scmp.ne.s32.totalorder %s1121_s15, %s1423_s20  ;;  %p1431_p12 = scmp.lt.s32.totalorder %s1429_s22, %s1423_s20 }
  0x3e   : > { %886 = vperm.xlu1 %1392, %v315_v16  }
  0x3f   : > { %891 = vperm.xlu0 %1391, %v316_v17   ;;  %p1425_p9 = pnand %p1424_p6, %p1581_p5  ;;  %p1432_p13 = por %p1431_p12, %p1430_p11 }
  0x41   : > { %p1426_p10 = pneg %p1425_p9 }
  0x42   : > { %881 = vperm.xlu1 %1392, %v314_v19  }
  0x43   : > { %876 = vperm.xlu0 %1391, %v313_v20   ;;  %p1433_p0 = pnand %p1432_p13, %p1426_p10 }
  0x46   : > { %919 = vperm.xlu1 %1392, %v325_v21  }
  0x47   : > { %914 = vperm.xlu0 %1391, %v324_v22  }
  0x4a   : > { %909 = vperm.xlu1 %1392, %v323_v23  }
  0x4b   : > { %904 = vperm.xlu0 %1391, %v322_v24  }
  0x4e   : > { %1026 = vperm.xlu1 %1392, %v326_v25  }
  0xa0   : > { %v542_v26 = vpop.permute.xlu1 %541 }
  0xa1   : > { %v332_v27 = vpop.permute.xlu0 %331 }
  0xa4   : > { %v544_v28 = vpop.permute.xlu1 %543 }
  0xa5   : > { %v334_v29 = vpop.permute.xlu0 %333  ;;  %v546_v30 = vsel %vm545_vm2, %v542_v26, %v544_v28 }
  0xa6   : > { %v336_v31 = vsel %vm335_vm3, %v332_v27, %v334_v29 }
  0xa7   : > { %1267 = vmatprep.subr.msk.mxu0 %vm350_vm0, %v336_v31 }
  0xa8   : > { %1268 = vmatpush3.msk.msra.mxu0 %vm350_vm0, %v336_v31  ;;  %v656_v34 = vpop.permute.xlu1 %655 }
  0xa9   : > { %1270 = vmatmul.mubr.msk.f32.vlgmr.msra.gmra.mxu0 %vm337_vm1, %v298_v32  ;;  %1283 = vmatprep.subr.msk.mxu0 %vm350_vm0, %v546_v30  ;;  %v654_v35 = vpop.permute.xlu0 %653 }
  0xaa   : > { %v658_v36 = vsel %vm657_vm4, %v654_v35, %v656_v34  ;;  %1284 = vmatpush3.msk.msra.mxu0 %vm350_vm0, %v546_v30  ;;  %1272 = vmatprep.mubr.msk.f32.mxu0 %vm337_vm1, %v299_v33 }
  0xab   : > { %1291 = vmatprep.subr.msk.mxu1 %vm350_vm0, %v658_v36 }
  0xac   : > { %1292 = vmatpush3.msk.msra.mxu1 %vm350_vm0, %v658_v36  ;;  %v768_v41 = vpop.permute.xlu1 %767 }
  0xad   : > { %1273 = vmatmul.mubr.msk.f32.gmra.mxu0 %vm337_vm1, %v300_v37  ;;  %v766_v42 = vpop.permute.xlu0 %765  ;;  %1294 = vmatmul.mubr.msk.f32.vlgmr.msra.gmra.mxu1 %vm337_vm1, %v306_v38  ;;  %v318_v37 = vld [vmem:[%s1731_s3 + $0x8] sm:$0xff]  ;;  %v319_v38 = vld [vmem:[%s1731_s3 + $0x10] sm:$0xff] }
  0xae   : > { %v770_v43 = vsel %vm769_vm5, %v766_v42, %v768_v41  ;;  %1285 = vmatprep.mubr.msk.f32.mxu0 %vm337_vm1, %v301_v39  ;;  %1296 = vmatprep.mubr.msk.f32.mxu1 %vm337_vm1, %v307_v40  ;;  %v320_v39 = vld [vmem:[%s1731_s3 + $0x18] sm:$0xff]  ;;  %v1497_v40 = vmov 0.0  }
  0xaf   : > { %1299 = vmatprep.subr.msk.mxu0 %vm350_vm0, %v770_v43 }
  0xb1   : > { %1286 = vmatmul.mubr.msk.f32.vlgmr.msra.gmra.mxu0 %vm337_vm1, %v302_v44  ;;  %1297 = vmatmul.mubr.msk.f32.gmra.mxu1 %vm337_vm1, %v308_v45 }
  0xb2   : > { %1300 = vmatpush3.msk.msra.mxu0 %vm350_vm0, %v770_v43  ;;  %1288 = vmatprep.mubr.msk.f32.mxu0 %vm337_vm1, %v303_v46 }
  0xb3   : > { %1315 = vmatprep.mubr.msk.f32.mxu1 %vm922_vm6, %v317_v52  ;;  %1321 = vmatprep.subr.mxu0 %v1497_v40 }
  0xb5   : > { %1289 = vmatmul.mubr.msk.f32.gmra.mxu0 %vm337_vm1, %v304_v47 }
  0xb6   : > { %1301 = vmatprep.mubr.msk.f32.mxu0 %vm337_vm1, %v309_v48 }
  0xb9   : > { %1302 = vmatmul.mubr.msk.f32.vlgmr.msra.gmra.mxu0 %vm337_vm1, %v310_v49  ;;  %v887_v11 = vpop.permute.xlu1 %886 }
  0xba   : > { %1304 = vmatprep.mubr.msk.f32.mxu0 %vm337_vm1, %v311_v50  ;;  %v892_v18 = vpop.permute.xlu0 %891 }
  0xbd   : > { %1305 = vmatmul.mubr.msk.f32.gmra.mxu0 %vm337_vm1, %v312_v51  ;;  %v882_v28 = vpop.permute.xlu1 %881 }
  0xbe   : > { %v877_v32 = vpop.permute.xlu0 %876  ;;  %1329 = vmatprep.mubr.msk.f32.mxu0 %vm1498_vm7, %v1497_v40 }
  0xc1   : > { %v920_v41 = vpop.permute.xlu1 %919 }
  0xc2   : > { %v915_v43 = vpop.permute.xlu0 %914 }
  0xc5   : > { %v910_v47 = vpop.permute.xlu1 %909 }
  0xc6   : > { %v905_v52 = vpop.permute.xlu0 %904 }
  0xf2   : > { %v1279_v53 = vpop.f32.mrf.mxu1 }
  0xf4   : > { %v519_v54 = vpop.f32.mrf.mxu1 }
  0xf6   : > { %v1282_v56 = vpop.f32.mrf.mxu1 }
  0xf8   : > { %v529_v59 = vpop.f32.mrf.mxu1 }
 0x169   : > { %v1271_v55 = vpop.f32.mrf.mxu0 }
 0x16a   : > { %v525_v2 = vadd.f32 %v1279_v53, %v1271_v55 }
 0x16b   : > { %v419_v57 = vpop.f32.mrf.mxu0 }
 0x16c   : > { %v520_v6 = vadd.f32 %v519_v54, %v419_v57  ;;  %v321_v57 = vld [vmem:[%s1733_s5] sm:$0x1] }
 0x16d   : > { %v1274_v58 = vpop.f32.mrf.mxu0  ;;  %v1295_v61 = vpop.f32.mrf.mxu1 }
 0x16e   : > { %v535_v3 = vadd.f32 %v1282_v56, %v1274_v58  ;;  %v1029_v58 = vlaneseq }
 0x16f   : > { %v429_v60 = vpop.f32.mrf.mxu0  ;;  %v739_v0 = vpop.f32.mrf.mxu1 }
 0x170   : > { %v530_v7 = vadd.f32 %v529_v59, %v429_v60  ;;  %v1030_v59 = vshrl.u32 %v1029_v58, 7 }
 0x171   : > { %v1287_v62 = vpop.f32.mrf.mxu0  ;;  %v1298_v5 = vpop.f32.mrf.mxu1 }
 0x172   : > { %v647_v8 = vadd.f32 %v1287_v62, %v525_v2  ;;  %v1031_v60 = vsub.s32 0, %v1030_v59 }
 0x173   : > { %v627_v63 = vpop.f32.mrf.mxu0  ;;  %v749_v14 = vpop.f32.mrf.mxu1 }
 0x174   : > { %v646_v12 = vadd.f32 %v627_v63, %v520_v6  ;;  %v759_v16 = vadd.f32 %v1295_v61, %v647_v8  ;;  %v1027_v61 = vpop.permute.xlu1 %1026 }
 0x175   : > { %v1290_v1 = vpop.f32.mrf.mxu0  ;;  %v1032_v62 = vrot.slane %v1027_v61, %v1031_v60 }
 0x176   : > { %v649_v9 = vadd.f32 %v1290_v1, %v535_v3  ;;  %v758_v20 = vadd.f32 %v739_v0, %v646_v12 }
 0x177   : > { %v637_v4 = vpop.f32.mrf.mxu0 }
 0x178   : > { %v648_v13 = vadd.f32 %v637_v4, %v530_v7  ;;  %v761_v17 = vadd.f32 %v1298_v5, %v649_v9 }
 0x179   : > { %v1303_v10 = vpop.f32.mrf.mxu0 }
 0x17a   : > { %v760_v21 = vadd.f32 %v749_v14, %v648_v13  ;;  %v871_v22 = vadd.f32 %v1303_v10, %v759_v16 }
 0x17b   : > { %v851_v15 = vpop.f32.mrf.mxu0 }
 0x17c   : > { %v870_v25 = vadd.f32 %v851_v15, %v758_v20  ;;  %v895_v29 = vadd.f32 %v882_v28, %v871_v22 }
 0x17d   : > { %v1306_v19 = vpop.f32.mrf.mxu0 }
 0x17e   : > { %v873_v23 = vadd.f32 %v1306_v19, %v761_v17  ;;  %v894_v33 = vadd.f32 %v877_v32, %v870_v25  ;;  %v899_v35 = vmax.f32 %v895_v29, 0.0 }
 0x17f   : > { %v861_v24 = vpop.f32.mrf.mxu0 }
 0x180   : > { %v897_v26 = vadd.f32 %v892_v18, %v873_v23  ;;  %v872_v27 = vadd.f32 %v861_v24, %v760_v21  ;;  %v898_v36 = vmax.f32 %v894_v33, 0.0 }
 0x182   : > { %v901_v30 = vmax.f32 %v897_v26, 0.0  ;;  %v896_v31 = vadd.f32 %v887_v11, %v872_v27 }
 0x184   : > { %v900_v34 = vmax.f32 %v896_v31, 0.0  ;;  %1307 = vmatprep.subr.mxu1 %v901_v30 }
 0x185   : > { %1308 = vmatpush3.msra.mxu1 %v901_v30 }
 0x186   : > { %1309 = vmatprep.subr.mxu1 %v900_v34 }
 0x187   : > { %1310 = vmatpush3.msra.mxu1 %v900_v34 }
 0x188   : > { %1311 = vmatprep.subr.mxu1 %v899_v35 }
 0x189   : > { %1312 = vmatpush3.msra.mxu1 %v899_v35 }
 0x18a   : > { %1313 = vmatprep.subr.mxu1 %v898_v36 }
 0x18b   : > { %1314 = vmatpush3.msra.mxu1 %v898_v36 }
 0x18c   : > { %1316 = vmatmul.mubr.msk.f32.vlgmr.msra.gmra.mxu1 %vm922_vm6, %v318_v37 }
 0x18d   : > { %1318 = vmatprep.mubr.msk.f32.mxu1 %vm922_vm6, %v319_v38 }
 0x190   : > { %1319 = vmatmul.mubr.msk.f32.gmra.mxu1 %vm922_vm6, %v320_v39 }
 0x24c   : > { %v1317_v42 = vpop.f32.mrf.mxu1 }
 0x24d   : > { %v1007_v49 = vadd.f32 %v1317_v42, %v910_v47 }
 0x24e   : > { %v1001_v44 = vpop.f32.mrf.mxu1 }
 0x24f   : > { %v1002_v53 = vadd.f32 %v1001_v44, %v905_v52  ;;  %v1021_v55 = vmax.f32 %v1007_v49, 0.0 }
 0x250   : > { %v1320_v45 = vpop.f32.mrf.mxu1 }
 0x251   : > { %v1017_v46 = vadd.f32 %v1320_v45, %v920_v41  ;;  %v1020_v56 = vmax.f32 %v1002_v53, 0.0 }
 0x252   : > { %v1011_v48 = vpop.f32.mrf.mxu1 }
 0x253   : > { %v1023_v50 = vmax.f32 %v1017_v46, 0.0  ;;  %v1012_v51 = vadd.f32 %v1011_v48, %v915_v43 }
 0x255   : > { %v1022_v54 = vmax.f32 %v1012_v51, 0.0  ;;  %1322 = vmatpush3.msra.mxu0 %v1023_v50 }
 0x256   : > { %1323 = vmatprep.subr.mxu0 %v1497_v40 }
 0x257   : > { %1324 = vmatpush3.msra.mxu0 %v1022_v54 }
 0x258   : > { %1325 = vmatprep.subr.mxu0 %v1497_v40 }
 0x259   : > { %1326 = vmatpush3.msra.mxu0 %v1021_v55 }
 0x25a   : > { %1327 = vmatprep.subr.mxu0 %v1497_v40 }
 0x25b   : > { %1328 = vmatpush3.msra.mxu0 %v1020_v56 }
 0x25c   : > { %1330 = vmatmul.mubr.msk.f32.vlgmr.msra.gmra.mxu0 %vm922_vm6, %v321_v57 }
 0x31c   : > { %v1102_v63 = vpop.f32.mrf.mxu0 }
 0x31d   : > { %v1103_v0 = vadd.f32 %v1102_v63, %v1032_v62 }
 0x31e   : > { %v1331_v1 = vpop.f32.mrf.mxu0 }
 0x31f   : > { %1106 = vst [vmem:[%s287_s14] sm:$0x1] %v1103_v0 }
 0x320   : > { %1436 = shalt.err (!%p1433_p0)
}
 0x321   : > { %s1437_s23 = scalar_lea.hbm %s1693_s18, 16  ;;  %s1441_s30 = scalar_lea.hbm %s1735_s7, 32 }
 0x322   : > { %p1438_p1 = scmp.ne.s32.totalorder %s1693_s18, %s1437_s23  ;;  %p1442_p4 = scmp.lt.s32.totalorder %s1693_s18, %s1735_s7 }
 0x323   : > { %p1443_p7 = scmp.lt.s32.totalorder %s1441_s30, %s1437_s23 }
 0x324   : > { %p1439_p2 = pnand %p1438_p1, %p1581_p5 }
 0x325   : > { %p1444_p8 = por %p1443_p7, %p1442_p4 }
 0x326   : > { %p1440_p3 = pneg %p1439_p2 }
 0x328   : > { %p1445_p6 = pnand %p1444_p8, %p1440_p3 }
 0x32a   : > { %1448 = shalt.err (!%p1445_p6)
}
 0x32b   : > { %1336 = dma.vmem_to_hbm [thread:$0]  (%p1581_p5), %s1121_s15, 16, %s1693_s18, %s1108_s19  }
 0x32c PF: > { %p1348_p9 = scmp.ge.s32.totalorder %s1487_s29, 2  ;;  %s1132_s14 = sand.u32 1, %s1475_s26  }
 0x32d   : > { %p1739_p10 = scmp.ne.s32.totalorder %s1737_s13, 0  ;;  %s1133_s16 = scalar_lea.sflag [#allocation5], %s1132_s14 }
 0x32f   : > { %p1343_p11 = pnand %p1348_p9, %p1739_p10 }
 0x331   : > { %p1344_p12 = pneg %p1343_p11 }
 0x333   : > { %1470 = dma.done.wait (%p1344_p12), %s1133_s16, 16  }
 0x334   : > { %1472 = vsyncadd (%p1344_p12), %s1133_s16, 4294967280  ;;  %p20_p13 = scmp.ge.s32.totalorder %s1568_s8, 4   ;;  %s1740_s26 = smov %s1479_s27 }
 0x335   : > { %s1741_s27 = smov %s1483_s28  ;;  %s1742_s28 = smov %s1579_s11 }
 0x336   : > { %s1743_s29 = smov %s1568_s8  ;;  %22 = sbr.rel (!%p20_p13) target bundleno = 7 (0x7), region = 88 }
 0x33b   :  { %1137 = vsyncpa [#allocation4], 1 }
 0x33c   :  { %1139 = vsyncpa [#allocation4 + $0x1], 1 }
 0x33d   :  { %1140 = vsyncpa [#allocation5], 1 }
 0x33e   :  { %1142 = vsyncpa [#allocation5 + $0x1], 1 }

</bundles_post_ra>
